<compile_context>
chip_gen: v7x
topology: tpu7x:2x2x1
jax: 0.10.0
libtpu: 0.0.40
codegen_flags: <defaults>
</compile_context>

<pallas_src>
import functools

import jax
import jax.numpy as jnp
from jax import lax
from jax.experimental import pallas as pl
from jax.experimental.pallas import tpu as pltpu


def _round_up(x, m):
    return ((x + m - 1) // m) * m


def latent_encoder_kernel(r_ref, w_ref, b_ref, out_ref):
    """Fused two-head linear: out = r @ W_cat.T + b_cat (single MXU contraction).

    r_ref:   (TB, r_dim)
    w_ref:   (Cpad, r_dim)   -- [w_mean; w_logvar; zero-pad] in PyTorch layout
    b_ref:   (1, Cpad)
    out_ref: (TB, Cpad)
    """
    y = lax.dot_general(
        r_ref[...], w_ref[...],
        dimension_numbers=(((1,), (1,)), ((), ())),   # contract on r_dim of both
        preferred_element_type=jnp.float32,
    )
    out_ref[...] = (y + b_ref[...]).astype(out_ref.dtype)


def _choose_tb(B, r_dim, cpad, itemsize=4, budget_bytes=16 * 1024 * 1024):
    """Pick a batch tile so double-buffered r + out tiles stay well under VMEM
    (conservative for v7x's 64 MiB chip / ~32 MiB scoped)."""
    per_row = 2 * (r_dim + cpad) * itemsize            # double-buffered in + out
    tb = max(8, min(B, budget_bytes // max(per_row, 1), 1024))
    if tb >= B:
        return B                                       # single full block is always legal
    return (tb // 8) * 8                               # sublane-aligned tile


@functools.partial(jax.jit, static_argnames=())
def latent_encoder(r_aggregated, w_mean, b_mean, w_logvar, b_logvar):
    """Mirrors LatentEncoder.forward.

    r_aggregated: (B, r_dim) float32
    w_mean, w_logvar: (z_dim, r_dim)   (PyTorch nn.Linear weight layout)
    b_mean, b_logvar: (z_dim,)
    Returns (mean, logvar), each (B, z_dim).
    """
    B, r_dim = r_aggregated.shape
    z_dim = w_mean.shape[0]
    C = 2 * z_dim
    Cpad = _round_up(C, 128)                # lane-dense output slab (unmasked stores)

    # Fuse the two heads: concat along the output-feature axis, zero-pad to Cpad.
    # Weights stay in the original (out_features, in_features) layout — no .T.
    w_cat = jnp.concatenate([w_mean, w_logvar], axis=0)              # (C, r_dim)
    b_cat = jnp.concatenate([b_mean, b_logvar], axis=0)              # (C,)
    w_pad = jnp.zeros((Cpad, r_dim), dtype=w_cat.dtype).at[:C, :].set(w_cat)
    b_pad = jnp.zeros((1, Cpad), dtype=b_cat.dtype).at[0, :C].set(b_cat)

    itemsize = jnp.dtype(r_aggregated.dtype).itemsize
    TB = _choose_tb(B, r_dim, Cpad, itemsize)
    grid = (pl.cdiv(B, TB),)

    # Explicit VMEM budget from the actual tile footprint (+ headroom), capped
    # so it is valid on v7x's smaller VMEM as well as v5e/v6e.
    tile_bytes = (2 * TB * (r_dim + Cpad) + 2 * Cpad * r_dim + 2 * Cpad) * itemsize
    vmem_limit = int(min(max(4 * tile_bytes, 8 * 1024 * 1024), 48 * 1024 * 1024))

    out = pl.pallas_call(
        latent_encoder_kernel,
        out_shape=jax.ShapeDtypeStruct((B, Cpad), r_aggregated.dtype),
        grid_spec=pltpu.PrefetchScalarGridSpec(
            num_scalar_prefetch=0,
            grid=grid,
            in_specs=[
                pl.BlockSpec((TB, r_dim), lambda i: (i, 0)),    # batch-tiled activations
                pl.BlockSpec((Cpad, r_dim), lambda i: (0, 0)),  # weights resident across grid
                pl.BlockSpec((1, Cpad), lambda i: (0, 0)),      # bias resident across grid
            ],
            out_specs=pl.BlockSpec((TB, Cpad), lambda i: (i, 0)),
        ),
        compiler_params=pltpu.CompilerParams(
            dimension_semantics=("parallel",),   # megacore / v7x dual-TC batch sharding
            vmem_limit_bytes=vmem_limit,
        ),
    )(r_aggregated, w_pad, b_pad)

    mean = out[:, :z_dim]
    logvar = out[:, z_dim:C]
    return mean, logvar


def _torch_linear_ref(x, w, b):
    return x @ w.T + b


if __name__ == "__main__":
    # Small shapes consistent with the module's forward: (B, r_dim) -> (B, z_dim).
    B, r_dim, z_dim = 8, 32, 16

    key = jax.random.PRNGKey(0)
    k_r, k_wm, k_bm, k_wl, k_bl = jax.random.split(key, 5)

    r_aggregated = jax.random.normal(k_r, (B, r_dim), dtype=jnp.float32)
    # PyTorch nn.Linear parameter shapes: W (z_dim, r_dim), b (z_dim,)
    w_mean = jax.random.normal(k_wm, (z_dim, r_dim), dtype=jnp.float32) * 0.1
    b_mean = jax.random.normal(k_bm, (z_dim,), dtype=jnp.float32) * 0.1
    w_logvar = jax.random.normal(k_wl, (z_dim, r_dim), dtype=jnp.float32) * 0.1
    b_logvar = jax.random.normal(k_bl, (z_dim,), dtype=jnp.float32) * 0.1

    mean, logvar = latent_encoder(r_aggregated, w_mean, b_mean, w_logvar, b_logvar)
    jax.block_until_ready((mean, logvar))

    # Correctness check against plain-JAX reference of nn.Linear semantics.
    mean_ref = _torch_linear_ref(r_aggregated, w_mean, b_mean)
    logvar_ref = _torch_linear_ref(r_aggregated, w_logvar, b_logvar)
    assert mean.shape == (B, z_dim) and logvar.shape == (B, z_dim)
    assert jnp.allclose(mean, mean_ref, atol=1e-5, rtol=1e-5)
    assert jnp.allclose(logvar, logvar_ref, atol=1e-5, rtol=1e-5)

    print("KERNEL_OK")
</pallas_src>

<mosaic_0001>
module attributes {stable_mosaic.version = 11 : i64} {
  func.func @latent_encoder_kernel(%arg0: i32, %arg1: memref<8x32xf32, #tpu.memory_space<vmem>>, %arg2: memref<128x32xf32, #tpu.memory_space<vmem>>, %arg3: memref<1x128xf32, #tpu.memory_space<vmem>>, %arg4: memref<8x128xf32, #tpu.memory_space<vmem>>) attributes {dimension_semantics = [#tpu.dimension_semantics<parallel>], iteration_bounds = array<i64: 1>, scalar_prefetch = 0 : i64, scratch_operands = 0 : i64, tpu.core_type = #tpu.core_type<tc>, window_params = [{transform_indices = @transform_0, window_bounds = array<i64: 8, 32>}, {pipeline_mode = #tpu.pipeline_mode<synchronous>, transform_indices = @transform_1, window_bounds = array<i64: 128, 32>}, {pipeline_mode = #tpu.pipeline_mode<synchronous>, transform_indices = @transform_2, window_bounds = array<i64: 1, 128>}, {transform_indices = @transform_3, window_bounds = array<i64: 8, 128>}]} {
    %c0 = arith.constant 0 : index
    %c0_0 = arith.constant 0 : index
    %0 = vector.load %arg1[%c0, %c0_0] : memref<8x32xf32, #tpu.memory_space<vmem>>, vector<8x32xf32>
    %c0_1 = arith.constant 0 : index
    %c0_2 = arith.constant 0 : index
    %1 = vector.load %arg2[%c0_1, %c0_2] : memref<128x32xf32, #tpu.memory_space<vmem>>, vector<128x32xf32>
    %cst = arith.constant dense<0.000000e+00> : vector<8x128xf32>
    %2 = tpu.matmul %0, %1, %cst {dimension_numbers = #tpu.dot_dimension_numbers<[1], [1], [0], [0], [0, 0, 1, 0], [], []>} : vector<8x32xf32>, vector<128x32xf32>, vector<8x128xf32> -> vector<8x128xf32>
    %c0_3 = arith.constant 0 : index
    %c0_4 = arith.constant 0 : index
    %3 = vector.load %arg3[%c0_3, %c0_4] : memref<1x128xf32, #tpu.memory_space<vmem>>, vector<1x128xf32>
    %4 = vector.broadcast %3 : vector<1x128xf32> to vector<8x128xf32>
    %5 = arith.addf %2, %4 : vector<8x128xf32>
    %c0_5 = arith.constant 0 : index
    %c0_6 = arith.constant 0 : index
    %6 = vector.load %arg4[%c0_5, %c0_6] : memref<8x128xf32, #tpu.memory_space<vmem>>, vector<8x128xf32>
    tpu.vector_store %arg4[%c0_5, %c0_6], %5 {strides = array<i32>} : memref<8x128xf32, #tpu.memory_space<vmem>>, vector<8x128xf32>,
    return
  }
  func.func @transform_0(%arg0: i32) -> (i32, i32) {
    %c0_i32 = arith.constant 0 : i32
    %c0_i32_0 = arith.constant 0 : i32
    return %arg0, %c0_i32 : i32, i32
  }
  func.func @transform_1(%arg0: i32) -> (i32, i32) {
    %c0_i32 = arith.constant 0 : i32
    %c0_i32_0 = arith.constant 0 : i32
    %c0_i32_1 = arith.constant 0 : i32
    return %c0_i32, %c0_i32_0 : i32, i32
  }
  func.func @transform_2(%arg0: i32) -> (i32, i32) {
    %c0_i32 = arith.constant 0 : i32
    %c0_i32_0 = arith.constant 0 : i32
    %c0_i32_1 = arith.constant 0 : i32
    return %c0_i32, %c0_i32_0 : i32, i32
  }
  func.func @transform_3(%arg0: i32) -> (i32, i32) {
    %c0_i32 = arith.constant 0 : i32
    %c0_i32_0 = arith.constant 0 : i32
    return %arg0, %c0_i32 : i32, i32
  }
}

</mosaic_0001>

<bundles_post_ra>
// kernel: latent_encoder.1
= control target key start
LH: loop header
LB: loop body
LE: loop exit
PB: predicated region body
PF: predicated region fallthrough
CT: control target
= control target key end

     0   :  { %vm38_vm0 = vcmask 261120   ;;  %v270_v0 = vmov 0.0|0.0   ;;  %vm271_vm2 = vmmov 0   ;;  %v272_v4 = vmov 0.0   ;;  %s373_s1 = inlined_call_operand.vmem [shape: f32[128,32], index: 1, kind: input, shape index: {}]   ;;  %s374_s0 = inlined_call_operand.vmem [shape: f32[8,32], index: 0, kind: input, shape index: {}]   ;;  %s375_s2 = inlined_call_operand.vmem [shape: f32[1,128], index: 2, kind: input, shape index: {}]   ;;  %s376_s3 = inlined_call_operand.vmem [shape: f32[8,128], index: 3, kind: output, shape index: {}]  }
   0x1   :  { %235 = vmatprep.subr.bf16.mxu0 %v270_v0  ;;  %v15_v1 = vld [vmem:[%s373_s1] sm:$0xff]  ;;  %v16_v2 = vld [vmem:[%s373_s1 + $0x8] sm:$0xff]  ;;  %vm301_vm1 = vmpackc.low %vm38_vm0, %vm38_vm0  ;;  %232 = vmatprep.mubr.msk.f32.mxu0 %vm271_vm2, %v272_v4 }
   0x2   :  { %v236_v5 = vpack.c.bf16 %v16_v2, %v15_v1  ;;  %v17_v6 = vld [vmem:[%s373_s1 + $0x10] sm:$0xff]  ;;  %v18_v7 = vld [vmem:[%s373_s1 + $0x18] sm:$0xff]  ;;  %v19_v9 = vld [vmem:[%s373_s1 + $0x20] sm:$0xff] }
   0x3   :  { %v240_v8 = vpack.c.bf16 %v18_v7, %v17_v6  ;;  %v20_v10 = vld [vmem:[%s373_s1 + $0x28] sm:$0xff]  ;;  %v21_v12 = vld [vmem:[%s373_s1 + $0x30] sm:$0xff]  ;;  %v22_v13 = vld [vmem:[%s373_s1 + $0x38] sm:$0xff] }
   0x4   :  { %238 = vmatpush3.bf16.xpose.msk.msra.mxu0 %vm301_vm1, %v236_v5  ;;  %v244_v11 = vpack.c.bf16 %v20_v10, %v19_v9  ;;  %v248_v14 = vpack.c.bf16 %v22_v13, %v21_v12  ;;  %v23_v15 = vld [vmem:[%s373_s1 + $0x40] sm:$0xff]  ;;  %v24_v16 = vld [vmem:[%s373_s1 + $0x48] sm:$0xff]  ;;  %v25_v18 = vld [vmem:[%s373_s1 + $0x50] sm:$0xff] }
   0x5   :  { %239 = vmatprep.subr.bf16.mxu0 %v270_v0  ;;  %v252_v17 = vpack.c.bf16 %v24_v16, %v23_v15  ;;  %v26_v19 = vld [vmem:[%s373_s1 + $0x58] sm:$0xff]  ;;  %v27_v21 = vld [vmem:[%s373_s1 + $0x60] sm:$0xff]  ;;  %v28_v22 = vld [vmem:[%s373_s1 + $0x68] sm:$0xff] }
   0x6   :  { %v256_v20 = vpack.c.bf16 %v26_v19, %v25_v18  ;;  %v260_v23 = vpack.c.bf16 %v28_v22, %v27_v21  ;;  %v29_v24 = vld [vmem:[%s373_s1 + $0x70] sm:$0xff]  ;;  %v30_v25 = vld [vmem:[%s373_s1 + $0x78] sm:$0xff]  ;;  %v14_v27 = vld [vmem:[%s374_s0] sm:$0xff] }
   0x7   :  { %v264_v26 = vpack.c.bf16 %v30_v25, %v29_v24  ;;  %v165_v28 = vld [vmem:[%s375_s2] ss:$0 sm:$0xff] }
   0xc   :  { %242 = vmatpush3.bf16.xpose.msk.msra.mxu0 %vm301_vm1, %v240_v8 }
   0xd   :  { %243 = vmatprep.subr.bf16.mxu0 %v270_v0 }
  0x14   :  { %246 = vmatpush3.bf16.xpose.msk.msra.mxu0 %vm301_vm1, %v244_v11 }
  0x15   :  { %247 = vmatprep.subr.bf16.mxu0 %v270_v0 }
  0x1c   :  { %250 = vmatpush3.bf16.xpose.msk.msra.mxu0 %vm301_vm1, %v248_v14 }
  0x1d   :  { %251 = vmatprep.subr.bf16.mxu0 %v270_v0 }
  0x24   :  { %254 = vmatpush3.bf16.xpose.msk.msra.mxu0 %vm301_vm1, %v252_v17 }
  0x25   :  { %255 = vmatprep.subr.bf16.mxu0 %v270_v0 }
  0x2c   :  { %258 = vmatpush3.bf16.xpose.msk.msra.mxu0 %vm301_vm1, %v256_v20 }
  0x2d   :  { %259 = vmatprep.subr.bf16.mxu0 %v270_v0 }
  0x34   :  { %262 = vmatpush3.bf16.xpose.msk.msra.mxu0 %vm301_vm1, %v260_v23 }
  0x35   :  { %263 = vmatprep.subr.bf16.mxu0 %v270_v0 }
  0x3c   :  { %266 = vmatpush3.bf16.xpose.msk.msra.mxu0 %vm301_vm1, %v264_v26 }
  0x43   :  { %233 = vmatmul.mubr.msk.f32.vlgmr.msra.gmra.mrb[0].mxu0 %vm38_vm0, %v14_v27 }
 0x116   :  { %v156_v29 = vpop.f32.mrb[0].mxu0 }
 0x117   :  { %v157_v30 = vadd.f32 %v165_v28, %v156_v29  ;;  %v234_v31 = vpop.f32.mrb[1].mxu0 }
 0x119   :  { %160 = vst [vmem:[%s376_s3] sm:$0xff] %v157_v30 }

</bundles_post_ra>
